<compile_context>
chip_gen: v5e
topology: v5e:2x2
jax: 0.10.0
libtpu: 0.0.40
codegen_flags: <defaults>
</compile_context>

<pallas_src>
import functools

import jax
import jax.numpy as jnp
from jax.experimental import pallas as pl
from jax.experimental.pallas import tpu as pltpu

BN_EPS = 1e-5
_VMEM_LIMIT = 32 * 1024 * 1024          # explicit scoped-VMEM limit (all gens)
_TILE_BUDGET = 10 * 1024 * 1024         # target bytes for pipelined buffers
_TSP_MAX = 2048                         # lane-tile cap (multiple of 128)


def _pick_tsp(sp, c, f, itemsize):
    """Spatial (lane) tile size: biggest that fits the VMEM budget, <=2048."""
    # double-buffered input (C) + double-buffered output (F) in x.dtype,
    # plus one (F, tsp) f32 intermediate in pass 2.
    per_lane = (2 * c + 2 * f) * itemsize + 4 * f
    cap = max(128, min(_TSP_MAX, (_TILE_BUDGET // per_lane) // 128 * 128))
    if sp <= cap:
        return sp                        # full extent (always a legal block)
    return cap                           # multiple of 128


def _make_stats_kernel(c, tsp, sp, ragged):
    """Pass 1: per-batch augmented Gram accumulation  Ga += Xa @ Xa^T."""

    def kernel(x_ref, stats_ref):
        # x_ref:     (1, C, Tsp)      input tile
        # stats_ref: (1, C+1, C+1)    per-batch accumulator (VMEM-resident
        #                             across the spatial axis)
        @pl.when(pl.program_id(1) == 0)
        def _init():
            stats_ref[...] = jnp.zeros_like(stats_ref)

        x = x_ref[0]                                          # (C, Tsp)
        if ragged:
            lane = jax.lax.broadcasted_iota(jnp.int32, (c, tsp), 1)
            valid = (lane + pl.program_id(1) * tsp) < sp
            x = jnp.where(valid, x, jnp.zeros_like(x))        # kill garbage
            ones_row = valid[0:1, :].astype(x.dtype)          # masked ones
        else:
            ones_row = jnp.ones((1, tsp), x.dtype)

        xa = jnp.concatenate([x, ones_row], axis=0)           # (C+1, Tsp)
        # Contract the lane dim of both operands (q.k^T-style, MXU-native).
        ga = jax.lax.dot_general(xa, xa, (((1,), (1,)), ((), ())),
                                 preferred_element_type=jnp.float32)
        stats_ref[0] += ga                                    # (C+1, C+1)

    return kernel


def _apply_kernel(x_ref, w_ref, ab_ref, o_ref):
    """Pass 2: recompute the cheap 1x1 conv and apply the folded BN affine."""
    # x_ref: (1, C, Tsp)  w_ref: (F, C)  ab_ref: (F, 2) f32  o_ref: (1, F, Tsp)
    y = jnp.dot(w_ref[...], x_ref[0],
                preferred_element_type=jnp.float32)           # (F, Tsp) f32
    ab = ab_ref[...]
    o_ref[0] = (y * ab[:, 0:1] + ab[:, 1:2]).astype(o_ref.dtype)


def downsample_forward(x, weight, gamma, beta, stride):
    """x: (N, C, H, W) NCHW.  weight: (F, C, 1, 1).  Returns (N, F, Ho, Wo)."""
    n, c, h, w = x.shape
    f = weight.shape[0]
    assert weight.shape[1] == c and weight.shape[2:] == (1, 1)

    if stride != 1:
        # Strided 1x1 conv == spatial subsample (one XLA strided slice; see
        # header comment for why this stays in the wrapper).
        x = x[:, :, ::stride, ::stride]
    ho, wo = x.shape[2], x.shape[3]
    sp = ho * wo
    x3 = x.reshape(n, c, sp)                                  # free reshape

    itemsize = jnp.dtype(x.dtype).itemsize
    tsp = _pick_tsp(sp, c, f, itemsize)
    num_t = pl.cdiv(sp, tsp)
    ragged = (sp % tsp) != 0
    grid = (n, num_t)

    # ---- Pass 1: per-batch augmented-Gram stats (F-independent) ----
    stats = pl.pallas_call(
        _make_stats_kernel(c, tsp, sp, ragged),
        out_shape=jax.ShapeDtypeStruct((n, c + 1, c + 1), jnp.float32),
        grid=grid,
        in_specs=[pl.BlockSpec((1, c, tsp), lambda b, t: (b, 0, t))],
        out_specs=pl.BlockSpec((1, c + 1, c + 1), lambda b, t: (b, 0, 0)),
        compiler_params=pltpu.CompilerParams(
            dimension_semantics=("parallel", "arbitrary"),
            vmem_limit_bytes=_VMEM_LIMIT),
    )(x3)

    # ---- Fold BN into a per-channel affine: out = y*a + b (f32 wrapper math)
    agg = jnp.sum(stats, axis=0)                              # (C+1, C+1)
    g_x = agg[:c, :c]                                         # sum x_c x_d
    s_x = agg[:c, c]                                          # sum x_c
    w_f32 = weight.reshape(f, c).astype(jnp.float32)
    count = jnp.float32(n * sp)
    sum_y = w_f32 @ s_x                                       # (F,)
    sum_yy = jnp.sum((w_f32 @ g_x) * w_f32, axis=1)           # (F,)
    mean = sum_y / count
    var = jnp.maximum(sum_yy / count - mean * mean, 0.0)      # biased var
    inv_std = jax.lax.rsqrt(var + BN_EPS)
    a_vec = gamma.astype(jnp.float32) * inv_std
    b_vec = beta.astype(jnp.float32) - mean * a_vec
    ab = jnp.stack([a_vec, b_vec], axis=1)                    # (F, 2) f32

    w2d = weight.reshape(f, c).astype(x.dtype)                # native-dtype MXU

    # ---- Pass 2: conv + affine, both grid axes parallel (megacore) ----
    out3 = pl.pallas_call(
        _apply_kernel,
        out_shape=jax.ShapeDtypeStruct((n, f, sp), x.dtype),
        grid=grid,
        in_specs=[pl.BlockSpec((1, c, tsp), lambda b, t: (b, 0, t)),
                  pl.BlockSpec((f, c), lambda b, t: (0, 0)),
                  pl.BlockSpec((f, 2), lambda b, t: (0, 0))],
        out_specs=pl.BlockSpec((1, f, tsp), lambda b, t: (b, 0, t)),
        compiler_params=pltpu.CompilerParams(
            dimension_semantics=("parallel", "parallel"),
            vmem_limit_bytes=_VMEM_LIMIT),
    )(x3, w2d, ab)

    return out3.reshape(n, f, ho, wo)


def reference_forward(x, weight, gamma, beta, stride):
    """Pure-JAX reference mirroring Conv2d(k=1, stride, bias=False)+BN(train)."""
    xs = x[:, :, ::stride, ::stride]
    y = jnp.einsum("nchw,fc->nfhw", xs, weight.reshape(weight.shape[0], -1),
                   precision=jax.lax.Precision.HIGHEST)
    mean = jnp.mean(y, axis=(0, 2, 3), keepdims=True)
    var = jnp.mean((y - mean) ** 2, axis=(0, 2, 3), keepdims=True)
    return (y - mean) / jnp.sqrt(var + BN_EPS) * gamma.reshape(1, -1, 1, 1) \
        + beta.reshape(1, -1, 1, 1)


if __name__ == "__main__":
    def _check(n, ni, nf, h, w, stride, key):
        kx, kw = jax.random.split(key)
        x = jax.random.normal(kx, (n, ni, h, w), dtype=jnp.float32)
        # Deterministic synthetic conv weight (~Conv2d default init scale)
        weight = jax.random.normal(kw, (nf, ni, 1, 1), dtype=jnp.float32) * (
            1.0 / jnp.sqrt(ni))
        # BatchNorm2d fresh init: gamma=1, beta=0
        gamma = jnp.ones((nf,), dtype=jnp.float32)
        beta = jnp.zeros((nf,), dtype=jnp.float32)

        out = jax.block_until_ready(
            downsample_forward(x, weight, gamma, beta, stride))
        ref = reference_forward(x, weight, gamma, beta, stride)
        assert out.shape == ref.shape, (out.shape, ref.shape)
        err = float(jnp.max(jnp.abs(out - ref)))
        assert jnp.allclose(out, ref, atol=5e-4, rtol=5e-4), err

    key = jax.random.PRNGKey(0)
    k1, k2, k3 = jax.random.split(key, 3)

    # Primary test: shapes consistent with Downsample(ni=4, nf=8, stride=2).
    _check(n=2, ni=4, nf=8, h=16, w=16, stride=2, key=k1)
    # Multi-tile spatial path: exercises the per-batch Gram accumulator,
    # spatial tiling/pipelining, and the masked ragged last tile (2304 lanes
    # -> 2048 + 256-valid partial block), stride=1 (no wrapper slice at all).
    _check(n=2, ni=4, nf=8, h=48, w=48, stride=1, key=k2)
    # Odd channel counts and spatial dims not divisible by the stride.
    _check(n=1, ni=3, nf=6, h=17, w=19, stride=2, key=k3)

    print("KERNEL_OK")
</pallas_src>

<mosaic_0001>
module attributes {stable_mosaic.version = 11 : i64} {
  func.func @kernel(%arg0: i32, %arg1: i32, %arg2: memref<1x4x64xf32, #tpu.memory_space<vmem>>, %arg3: memref<1x5x5xf32, #tpu.memory_space<vmem>>) attributes {dimension_semantics = [#tpu.dimension_semantics<parallel>, #tpu.dimension_semantics<arbitrary>], iteration_bounds = array<i64: 2, 1>, scalar_prefetch = 0 : i64, scratch_operands = 0 : i64, tpu.core_type = #tpu.core_type<tc>, window_params = [{transform_indices = @transform_0, window_bounds = array<i64: 1, 4, 64>}, {transform_indices = @transform_1, window_bounds = array<i64: 1, 5, 5>}]} {
    %c0_i32 = arith.constant 0 : i32
    %0 = arith.cmpi eq, %arg1, %c0_i32 : i32
    %1 = arith.extui %0 : i1 to i32
    %c0_i32_0 = arith.constant 0 : i32
    %2 = arith.cmpi ne, %1, %c0_i32_0 : i32
    scf.if %2 {
      %cst_10 = arith.constant 0.000000e+00 : f32
      %14 = vector.broadcast %cst_10 : f32 to vector<1x5x5xf32>
      %c0_11 = arith.constant 0 : index
      %c0_12 = arith.constant 0 : index
      %c0_13 = arith.constant 0 : index
      %15 = vector.load %arg3[%c0_11, %c0_12, %c0_13] : memref<1x5x5xf32, #tpu.memory_space<vmem>>, vector<1x5x5xf32>
      tpu.vector_store %arg3[%c0_11, %c0_12, %c0_13], %14 {strides = array<i32>} : memref<1x5x5xf32, #tpu.memory_space<vmem>>, vector<1x5x5xf32>,
    } else {
    }
    %c0 = arith.constant 0 : index
    %c0_1 = arith.constant 0 : index
    %c0_2 = arith.constant 0 : index
    %3 = vector.load %arg2[%c0, %c0_1, %c0_2] : memref<1x4x64xf32, #tpu.memory_space<vmem>>, vector<1x4x64xf32>
    %4 = vector.shape_cast %3 : vector<1x4x64xf32> to vector<4x64xf32>
    %cst = arith.constant 1.000000e+00 : f32
    %5 = vector.broadcast %cst : f32 to vector<1x64xf32>
    %6 = tpu.concatenate %4, %5 in 0 : vector<4x64xf32>, vector<1x64xf32> -> vector<5x64xf32>
    %cst_3 = arith.constant dense<0.000000e+00> : vector<5x5xf32>
    %7 = tpu.matmul %6, %6, %cst_3 {dimension_numbers = #tpu.dot_dimension_numbers<[1], [1], [0], [0], [0, 0, 1, 0], [], []>} : vector<5x64xf32>, vector<5x64xf32>, vector<5x5xf32> -> vector<5x5xf32>
    %c0_4 = arith.constant 0 : index
    %c0_5 = arith.constant 0 : index
    %c0_6 = arith.constant 0 : index
    %8 = vector.load %arg3[%c0_4, %c0_5, %c0_6] : memref<1x5x5xf32, #tpu.memory_space<vmem>>, vector<1x5x5xf32>
    %9 = vector.shape_cast %8 : vector<1x5x5xf32> to vector<5x5xf32>
    %10 = arith.addf %9, %7 : vector<5x5xf32>
    %c0_7 = arith.constant 0 : index
    %c0_8 = arith.constant 0 : index
    %c0_9 = arith.constant 0 : index
    %11 = vector.load %arg3[%c0_7, %c0_8, %c0_9] : memref<1x5x5xf32, #tpu.memory_space<vmem>>, vector<1x5x5xf32>
    %12 = vector.shape_cast %11 : vector<1x5x5xf32> to vector<5x5xf32>
    %13 = vector.shape_cast %10 : vector<5x5xf32> to vector<1x5x5xf32>
    tpu.vector_store %arg3[%c0_7, %c0_8, %c0_9], %13 {strides = array<i32>} : memref<1x5x5xf32, #tpu.memory_space<vmem>>, vector<1x5x5xf32>,
    return
  }
  func.func @transform_0(%arg0: i32, %arg1: i32) -> (i32, i32, i32) {
    %c0_i32 = arith.constant 0 : i32
    %c0_i32_0 = arith.constant 0 : i32
    return %arg0, %c0_i32, %arg1 : i32, i32, i32
  }
  func.func @transform_1(%arg0: i32, %arg1: i32) -> (i32, i32, i32) {
    %c0_i32 = arith.constant 0 : i32
    %c0_i32_0 = arith.constant 0 : i32
    %c0_i32_1 = arith.constant 0 : i32
    return %arg0, %c0_i32, %c0_i32_0 : i32, i32, i32
  }
}

</mosaic_0001>

<bundles_post_ra>
// kernel: tpu_custom_call.1
= control target key start
LH: loop header
LB: loop body
LE: loop exit
PB: predicated region body
PF: predicated region fallthrough
CT: control target
= control target key end

     0   :  { %6 = vsyncpa [#allocation3], 0  ;;  %s510_s0 = inlined_call_operand.hbm [shape: f32[2,4,64], index: 0, kind: input, shape index: {}]   ;;  %s511_s1 = inlined_call_operand.vmem [shape: f32[2,5,5], index: 1, kind: output, shape index: {}]  }
   0x1   :  { %8 = vsyncpa [#allocation3 + $0x1], 0  ;;  %s422_s6 = smov 0   ;;  %s424_s7 = smov 0  }
   0x2   :  { %s426_s8 = smov 0   ;;  %s428_s9 = smov 0  }
   0x3   :  { %s430_s10 = smov 0   ;;  %s432_s11 = smov 0  }
   0x4 LB: > { %s260_s12 = sadd.s32 4294967295, %s409_s11   ;;  %s26_s13 = sadd.s32 1, %s405_s10  ;;  %s409_s11 = sphi %s432_s11, %s14_s11   ;;  %s405_s10 = sphi %s430_s10, %s518_s10   ;;  %s401_s9 = sphi %s428_s9, %s517_s9   ;;  %s397_s8 = sphi %s426_s8, %s516_s8   ;;  %s393_s7 = sphi %s424_s7, %s515_s7   ;;  %s389_s6 = sphi %s422_s6, %s514_s6  }
   0x5   : > { %p28_p0 = scmp.ge.s32.totalorder %s26_s13, 2  ;;  %s35_s14 = sadd.s32 1, %s397_s8 }
   0x6   : > { %p42_p1 = scmp.ne.s32.totalorder %s397_s8, %s393_s7  ;;  %p43_p2 = scmp.eq.s32.totalorder %s409_s11, 0 }
   0x7   : > { %s520_s13 = smov (%p28_p0, %s26_s13), 0  ;;  %p48_p4 = scmp.ne.s32.totalorder %s393_s7, %s389_s6 }
   0x8   : > { %p458_p3 = por %p43_p2, %p42_p1  ;;  %s30_s16 = ssub.s32 %s405_s10, %s520_s13 }
   0x9   : > { %p49_p5 = scmp.eq.s32.totalorder %s260_s12, 0  ;;  %p33_p6 = scmp.eq.s32.totalorder %s30_s16, 0 }
   0xa   : > { %p279_p8 = scmp.lt.s32.totalorder %s409_s11, 2  ;;  %s98_s19 = sand.u32 1, %s397_s8  }
   0xb   : > { %p465_p7 = por %p49_p5, %p48_p4  ;;  %s265_s20 = sshll.u32 %s405_s10, 2 }
   0xc   : > { %s471_s18 = scalar_select %p33_p6, %s397_s8, %s35_s14  }
   0xd   : > { %s264_s21 = sshll.u32 %s98_s19, 2  ;;  %s107_s24 = scalar_lea.hbm %s510_s0, %s265_s20 }
   0xe   : > { %s109_s25 = sshll.u32 %s107_s24, 4  ;;  %s102_s26 = scalar_lea.vmem [#allocation2], %s264_s21  ;;  %s110_s25 = int_to_ptr.hbm [resolvable:$true] %s109_s25 }
   0xf   : > { %s111_s27 = sshll.u32 %s102_s26, 4  ;;  %p276_p9 = pnand %p279_p8, %p458_p3  ;;  %s112_s27 = int_to_ptr.vmem [resolvable:$true] %s111_s27 }
  0x10   : > { %p266_p10 = scmp.ge.s32.totalorder %s409_s11, 1  ;;  %p116_p11 = scmp.lt.s32.totalorder %s409_s11, 3 }
  0x11   : > { %s99_s28 = scalar_lea.sflag [#allocation3], %s98_s19 }
  0x12   : > { %278 = dma.hbm_to_vmem [thread:$0]  (!%p276_p9), %s110_s25, 64, %s112_s27, %s99_s28  }
  0x13   : > { %p117_p12 = pnand %p266_p10, %p116_p11 }
  0x14   : > { %s122_s29 = sand.u32 (!%p117_p12), 1, %s393_s7  }
  0x15   : > { %120 = sbr.rel (%p117_p12) target bundleno = 162 (0xa2), region = 24  ;;  %s267_s30 = sshll.u32 (!%p117_p12), %s122_s29, 2 }
  0x16   : > { %s123_s2 = scalar_lea.sflag (!%p117_p12), [#allocation3], %s122_s29  ;;  %s126_s3 = scalar_lea.vmem (!%p117_p12), [#allocation2], %s267_s30 }
  0x1a   : > { %384 = dma.done.wait (%p465_p7), %s123_s2, 64  }
  0x1b   : > { %386 = vsyncadd (%p465_p7), %s123_s2, 4294967232  ;;  %p145_p13 = scmp.lt.s32.totalorder %s401_s9, 1  ;;  %vm153_vm0 = vcmask 36864   ;;  %vm156_vm1 = vcmask 1043456   ;;  %v411_v0 = vmov 0.0   ;;  %vm158_vm2 = vcmask 523264  }
  0x1c   : > { %v155_v1 = vld [vmem:[%s126_s3] sm:$0xf] }
  0x1d   : > { %s522_s9 = smov (!%p145_p13, %s401_s9), 1  ;;  %v157_v2 = vsel %vm156_vm1, %v155_v1, 1.0 }
  0x1e   : > { %s268_s4 = sshll.u32 %s522_s9, 3  ;;  %269 = vmatpush.xpose.msk.msra.mxu0 %vm158_vm2, %v157_v2 }
  0x1f   : > { %s148_s12 = scalar_lea.vmem %s511_s1, %s268_s4 }
  0x20   : > { %154 = vst.msk [vmem:[%s148_s12] sm:$0x1f] %vm153_vm0, %v411_v0 }
  0x21   : > { %270 = vmatmul.msk.f32.vlgmr.msra.gmra.mxu0 %vm158_vm2, %v157_v2 }
  0x27   : > { %v182_v3 = vld [vmem:[%s148_s12] sm:$0x1f] }
  0x9e   : > { %v179_v4 = vpop.f32.mrf.mxu0 }
  0x9f   : > { %v183_v5 = vadd.f32 %v182_v3, %v179_v4 }
  0xa1   : > { %185 = vst.msk [vmem:[%s148_s12] sm:$0x1f] %vm153_vm0, %v183_v5 }
  0xa2 PF: > { %s14_s11 = sadd.s32 1, %s409_s11   ;;  %s514_s6 = smov %s393_s7 }
  0xa3   : > { %p11_p0 = scmp.ge.s32.totalorder %s14_s11, 4   ;;  %s515_s7 = smov %s397_s8 }
  0xa4   : > { %s516_s8 = smov %s471_s18  ;;  %s517_s9 = smov %s405_s10 }
  0xa5   : > { %s518_s10 = smov %s520_s13  ;;  %13 = sbr.rel (!%p11_p0) target bundleno = 4 (0x4), region = 68 }
  0xaa   :  { %205 = vsyncpa [#allocation3], 1 }
  0xab   :  { %207 = vsyncpa [#allocation3 + $0x1], 1 }

</bundles_post_ra>
